<compile_context>
chip_gen: v7x
topology: tpu7x:2x2x1
jax: 0.10.0
libtpu: 0.0.40
codegen_flags: <defaults>
</compile_context>

<pallas_src>
import functools

import jax
import jax.numpy as jnp
import numpy as np
from jax.experimental import pallas as pl
from jax.experimental.pallas import tpu as pltpu


def flow_kernel(x_ref, mask_ref, rowsum_ref, exps_ref, t_ref, stot_ref,
                xout_ref, stats_ref, *, inv_n, unroll, binary_mask):
    """One batch tile of the whole K-transform flow chain.

    x_ref / mask_ref / xout_ref : (Bt, Lp)  lane-dense, Lp = pad128(N*D)
    rowsum_ref                  : (Bt, 1)   sum_n node_mask[b, n] (precomputed)
    exps_ref / t_ref            : (K, Lp)   exp(s_k) / t_k, resident across grid
    stot_ref                    : (1, 1)    sum_{k,d} s[k,d] (SMEM scalar)
    stats_ref                   : (Bt, 2)   lane 0 = ldj, lane 1 = reg_term
    """
    x0 = x_ref[...].astype(jnp.float32)
    m = mask_ref[...].astype(jnp.float32)            # bf16 stream -> f32 compute
    num_transforms = exps_ref.shape[0]

    def body(k, carry):
        x, sq = carry
        es = exps_ref[pl.ds(k, 1), :]                # (1, Lp) exp(s_k) (EUP hoisted)
        tk = t_ref[pl.ds(k, 1), :]                   # (1, Lp)
        x_new = m * (x * es + tk)                    # masked affine transform
        if binary_mask:
            # m * x_new^2 == x_new^2: x_new already has a factor of m and
            # m^k == m for a 0/1 mask.  Saves one VALU op/elem/step.
            sq = sq + x_new * x_new
        else:
            sq = sq + m * (x_new * x_new)
        return x_new, sq

    x_fin, sq = jax.lax.fori_loop(
        0, num_transforms, body, (x0, jnp.zeros_like(x0)), unroll=unroll)

    xout_ref[...] = x_fin.astype(xout_ref.dtype)

    # One cross-lane (XLU) reduction per tile for reg; ldj uses the precomputed
    # per-row mask sum, so no full-width reduce is needed for it.
    reg = jnp.sum(sq, axis=-1, keepdims=True) * inv_n             # (Bt, 1)
    ldj = rowsum_ref[...].astype(jnp.float32) * stot_ref[0, 0]    # (Bt, 1)

    # Merge [ldj, reg] into one (Bt, 2) stats tile (single small writeback).
    lane = jax.lax.broadcasted_iota(jnp.int32, stats_ref.shape, 1)
    stats = jnp.where(lane == 0, ldj, reg)
    stats_ref[...] = stats.astype(stats_ref.dtype)


def _vmem_physical_bytes():
    try:
        info = pltpu.get_tpu_info()
        cap = int(getattr(info, "vmem_capacity_bytes", 0) or 0)
        if cap > 0:
            return cap
    except Exception:
        pass
    return 64 << 20        # conservative default (v7x per-TensorCore VMEM)


def _choose_block_b(batch, lane_len, x_itemsize, num_transforms, budget_bytes):
    """Largest 8-aligned batch tile whose *real* VMEM footprint fits the budget.

    Per tile row:
      x in + x out, double-buffered : 2 * 2 * Lp * itemsize
      bf16 mask in, double-buffered : 2 * Lp * 2
      ~4 live fp32 arrays in-kernel : 4 * Lp * 4
    Plus double-buffered resident params exp(s)/t: 2 * 2 * K * Lp * 4.
    """
    per_row = lane_len * (4 * x_itemsize + 2 * 2 + 4 * 4)
    fixed = 4 * num_transforms * lane_len * 4 + (256 << 10)   # params + slack
    max_rows = (budget_bytes - fixed) // per_row
    max_rows = max(8, (max_rows // 8) * 8)
    # Keep the grid >= 2 steps whenever the batch allows it, so both v7x
    # TensorCores get work and the HBM<->VMEM pipeline actually overlaps.
    if batch > 8:
        max_rows = min(max_rows, max(8, (batch // 2) // 8 * 8))
    # Never exceed the (padded) batch.
    max_rows = min(max_rows, max(8, ((batch + 7) // 8) * 8))
    return int(max_rows)


def flow_forward(x, node_mask, s, t, *, block_b=None, assume_binary_mask=True):
    """Runs the whole flow (K masked affine transforms) in one batch-tiled
    pallas_call.  node_mask must be (B, N, 1); with assume_binary_mask=True the
    mask must contain only {0, 1} (as it does in the reference model)."""
    B, N, D = x.shape
    # ldj factorization (sum_n m * sum_{k,d} s) requires a node-level mask.
    assert node_mask.shape == (B, N, 1)
    K = s.shape[0]
    L = N * D
    dtype = x.dtype
    itemsize = jnp.dtype(dtype).itemsize

    # Lane-dense layout: pad lanes to a multiple of 128.
    Lp = ((L + 127) // 128) * 128

    phys_vmem = _vmem_physical_bytes()
    vmem_limit = int(phys_vmem * 0.75)   # above the 16/32 MiB scoped defaults
    budget = int(vmem_limit * 0.85)      # headroom inside the explicit limit

    if block_b is None:
        block_b = _choose_block_b(B, Lp, itemsize, K, budget)
    assert block_b % 8 == 0
    Bp = ((B + block_b - 1) // block_b) * block_b   # pad batch to the tile

    # ---- cheap XLA prep (layout plumbing, hoisted out of the hot kernel) ----
    # NOTE: x could optionally be streamed in bf16 on v5e for ~2x less HBM
    # traffic; kept in the input dtype here to preserve accuracy.
    x_flat = jnp.pad(x.reshape(B, L), ((0, Bp - B), (0, Lp - L)))
    mask_bcast = jnp.broadcast_to(node_mask, (B, N, D)).reshape(B, L)
    mask_flat = jnp.pad(mask_bcast, ((0, Bp - B), (0, Lp - L))).astype(jnp.bfloat16)
    rowsum = jnp.pad(jnp.sum(node_mask.astype(jnp.float32), axis=(1, 2)).reshape(B, 1),
                     ((0, Bp - B), (0, 0)))                       # (Bp, 1)
    s32 = s.astype(jnp.float32)
    exp_s_flat = jnp.pad(jnp.tile(jnp.exp(s32), (1, N)), ((0, 0), (0, Lp - L)))  # (K, Lp)
    t_flat = jnp.pad(jnp.tile(t.astype(jnp.float32), (1, N)), ((0, 0), (0, Lp - L)))
    stot = jnp.sum(s32).reshape(1, 1)                             # sum_{k,d} s[k,d]

    grid = (Bp // block_b,)
    tile = lambda b: (b, 0)
    const = lambda b: (0, 0)

    kernel = functools.partial(
        flow_kernel,
        inv_n=1.0 / float(L),            # n_elem of the *original* (N, D)
        unroll=min(K, 4),                # cap unroll for large K
        binary_mask=bool(assume_binary_mask))

    x_out, stats = pl.pallas_call(
        kernel,
        grid=grid,
        in_specs=[
            pl.BlockSpec((block_b, Lp), tile),                     # x tile
            pl.BlockSpec((block_b, Lp), tile),                     # bf16 mask tile
            pl.BlockSpec((block_b, 1), tile),                      # mask row-sum
            pl.BlockSpec((K, Lp), const),                          # exp(s), resident
            pl.BlockSpec((K, Lp), const),                          # t, resident
            pl.BlockSpec(memory_space=pltpu.MemorySpace.SMEM),     # stot scalar
        ],
        out_specs=[
            pl.BlockSpec((block_b, Lp), tile),                     # x_out tile
            pl.BlockSpec((block_b, 2), tile),                      # [ldj, reg]
        ],
        out_shape=[
            jax.ShapeDtypeStruct((Bp, Lp), dtype),
            jax.ShapeDtypeStruct((Bp, 2), dtype),
        ],
        compiler_params=pltpu.CompilerParams(
            dimension_semantics=("parallel",),
            vmem_limit_bytes=vmem_limit),
    )(x_flat, mask_flat, rowsum, exp_s_flat, t_flat, stot)

    x_out = x_out[:B, :L].reshape(B, N, D)
    return x_out, stats[:B, 0], stats[:B, 1]


def flow_forward_ref(x, node_mask, s, t):
    """Pure-JAX reference mirroring Flow.forward semantics exactly."""
    B = x.shape[0]
    ldj = jnp.zeros((B,), x.dtype)
    reg = jnp.zeros((B,), x.dtype)
    n_elem = x.shape[1] * x.shape[2]
    for k in range(s.shape[0]):
        sk = s[k].reshape(1, 1, -1)
        tk = t[k].reshape(1, 1, -1)
        x = node_mask * (x * jnp.exp(sk) + tk)
        ldj = ldj + jnp.sum(node_mask * sk, axis=(1, 2))
        reg = reg + jnp.sum(node_mask * (x * x), axis=(1, 2)) / float(n_elem)
    return x, ldj, reg


if __name__ == "__main__":
    # batch, nodes, feature dim, number of transformations (N*D = 256 lanes)
    B, N, D, K = 16, 8, 32, 4

    key = jax.random.PRNGKey(0)
    kx, ks, kt = jax.random.split(key, 3)

    x = jax.random.normal(kx, (B, N, D), dtype=jnp.float32)
    # node_mask: binary node-existence mask, zero out trailing nodes of a
    # couple of batch elements.
    node_mask = jnp.ones((B, N, 1), dtype=jnp.float32)
    node_mask = node_mask.at[1, N - 2:, :].set(0.0)
    node_mask = node_mask.at[5, N - 3:, :].set(0.0)

    # Deterministic per-transform parameters (small log-scales + shifts).
    s = 0.1 * jax.random.normal(ks, (K, D), dtype=jnp.float32)
    t = 0.5 * jax.random.normal(kt, (K, D), dtype=jnp.float32)

    x_out, ldj, reg = flow_forward(x, node_mask, s, t)
    jax.block_until_ready((x_out, ldj, reg))

    x_ref, ldj_ref, reg_ref = flow_forward_ref(x, node_mask, s, t)
    np.testing.assert_allclose(np.asarray(x_out), np.asarray(x_ref), rtol=1e-5, atol=1e-5)
    np.testing.assert_allclose(np.asarray(ldj), np.asarray(ldj_ref), rtol=1e-5, atol=1e-5)
    np.testing.assert_allclose(np.asarray(reg), np.asarray(reg_ref), rtol=1e-5, atol=1e-5)

    print("KERNEL_OK")
</pallas_src>

<mosaic_0001>
module attributes {stable_mosaic.version = 11 : i64} {
  func.func @flow_kernel(%arg0: i32, %arg1: memref<8x256xf32, #tpu.memory_space<vmem>>, %arg2: memref<8x256xbf16, #tpu.memory_space<vmem>>, %arg3: memref<8x1xf32, #tpu.memory_space<vmem>>, %arg4: memref<4x256xf32, #tpu.memory_space<vmem>>, %arg5: memref<4x256xf32, #tpu.memory_space<vmem>>, %arg6: memref<1x1xf32, #tpu.memory_space<smem>>, %arg7: memref<8x256xf32, #tpu.memory_space<vmem>>, %arg8: memref<8x2xf32, #tpu.memory_space<vmem>>) attributes {dimension_semantics = [#tpu.dimension_semantics<parallel>], iteration_bounds = array<i64: 2>, scalar_prefetch = 0 : i64, scratch_operands = 0 : i64, tpu.core_type = #tpu.core_type<tc>, window_params = [{transform_indices = @transform_0, window_bounds = array<i64: 8, 256>}, {transform_indices = @transform_1, window_bounds = array<i64: 8, 256>}, {transform_indices = @transform_2, window_bounds = array<i64: 8, 1>}, {pipeline_mode = #tpu.pipeline_mode<synchronous>, transform_indices = @transform_3, window_bounds = array<i64: 4, 256>}, {pipeline_mode = #tpu.pipeline_mode<synchronous>, transform_indices = @transform_4, window_bounds = array<i64: 4, 256>}, {transform_indices = @transform_5, window_bounds = array<i64: 1, 1>}, {transform_indices = @transform_6, window_bounds = array<i64: 8, 256>}, {transform_indices = @transform_7, window_bounds = array<i64: 8, 2>}]} {
    %c0 = arith.constant 0 : index
    %c0_0 = arith.constant 0 : index
    %0 = vector.load %arg1[%c0, %c0_0] : memref<8x256xf32, #tpu.memory_space<vmem>>, vector<8x256xf32>
    %c0_1 = arith.constant 0 : index
    %c0_2 = arith.constant 0 : index
    %1 = vector.load %arg2[%c0_1, %c0_2] : memref<8x256xbf16, #tpu.memory_space<vmem>>, vector<8x256xbf16>
    %2 = arith.extf %1 : vector<8x256xbf16> to vector<8x256xf32>
    %cst = arith.constant 0.000000e+00 : f32
    %3 = vector.broadcast %cst : f32 to vector<8x256xf32>
    %c0_i32 = arith.constant 0 : i32
    %4 = arith.index_cast %c0_i32 : i32 to index
    %c0_3 = arith.constant 0 : index
    %5 = vector.load %arg4[%4, %c0_3] : memref<4x256xf32, #tpu.memory_space<vmem>>, vector<1x256xf32>
    %6 = arith.index_cast %c0_i32 : i32 to index
    %c0_4 = arith.constant 0 : index
    %7 = vector.load %arg5[%6, %c0_4] : memref<4x256xf32, #tpu.memory_space<vmem>>, vector<1x256xf32>
    %8 = vector.broadcast %5 : vector<1x256xf32> to vector<8x256xf32>
    %9 = arith.mulf %0, %8 : vector<8x256xf32>
    %10 = vector.broadcast %7 : vector<1x256xf32> to vector<8x256xf32>
    %11 = arith.addf %9, %10 : vector<8x256xf32>
    %12 = arith.mulf %2, %11 : vector<8x256xf32>
    %13 = arith.mulf %12, %12 : vector<8x256xf32>
    %14 = arith.addf %3, %13 : vector<8x256xf32>
    %c1_i32 = arith.constant 1 : i32
    %15 = arith.index_cast %c1_i32 : i32 to index
    %c0_5 = arith.constant 0 : index
    %16 = vector.load %arg4[%15, %c0_5] : memref<4x256xf32, #tpu.memory_space<vmem>>, vector<1x256xf32>
    %17 = arith.index_cast %c1_i32 : i32 to index
    %c0_6 = arith.constant 0 : index
    %18 = vector.load %arg5[%17, %c0_6] : memref<4x256xf32, #tpu.memory_space<vmem>>, vector<1x256xf32>
    %19 = vector.broadcast %16 : vector<1x256xf32> to vector<8x256xf32>
    %20 = arith.mulf %12, %19 : vector<8x256xf32>
    %21 = vector.broadcast %18 : vector<1x256xf32> to vector<8x256xf32>
    %22 = arith.addf %20, %21 : vector<8x256xf32>
    %23 = arith.mulf %2, %22 : vector<8x256xf32>
    %24 = arith.mulf %23, %23 : vector<8x256xf32>
    %25 = arith.addf %14, %24 : vector<8x256xf32>
    %c2_i32 = arith.constant 2 : i32
    %26 = arith.index_cast %c2_i32 : i32 to index
    %c0_7 = arith.constant 0 : index
    %27 = vector.load %arg4[%26, %c0_7] : memref<4x256xf32, #tpu.memory_space<vmem>>, vector<1x256xf32>
    %28 = arith.index_cast %c2_i32 : i32 to index
    %c0_8 = arith.constant 0 : index
    %29 = vector.load %arg5[%28, %c0_8] : memref<4x256xf32, #tpu.memory_space<vmem>>, vector<1x256xf32>
    %30 = vector.broadcast %27 : vector<1x256xf32> to vector<8x256xf32>
    %31 = arith.mulf %23, %30 : vector<8x256xf32>
    %32 = vector.broadcast %29 : vector<1x256xf32> to vector<8x256xf32>
    %33 = arith.addf %31, %32 : vector<8x256xf32>
    %34 = arith.mulf %2, %33 : vector<8x256xf32>
    %35 = arith.mulf %34, %34 : vector<8x256xf32>
    %36 = arith.addf %25, %35 : vector<8x256xf32>
    %c3_i32 = arith.constant 3 : i32
    %37 = arith.index_cast %c3_i32 : i32 to index
    %c0_9 = arith.constant 0 : index
    %38 = vector.load %arg4[%37, %c0_9] : memref<4x256xf32, #tpu.memory_space<vmem>>, vector<1x256xf32>
    %39 = arith.index_cast %c3_i32 : i32 to index
    %c0_10 = arith.constant 0 : index
    %40 = vector.load %arg5[%39, %c0_10] : memref<4x256xf32, #tpu.memory_space<vmem>>, vector<1x256xf32>
    %41 = vector.broadcast %38 : vector<1x256xf32> to vector<8x256xf32>
    %42 = arith.mulf %34, %41 : vector<8x256xf32>
    %43 = vector.broadcast %40 : vector<1x256xf32> to vector<8x256xf32>
    %44 = arith.addf %42, %43 : vector<8x256xf32>
    %45 = arith.mulf %2, %44 : vector<8x256xf32>
    %46 = arith.mulf %45, %45 : vector<8x256xf32>
    %47 = arith.addf %36, %46 : vector<8x256xf32>
    %c4_i32 = arith.constant 4 : i32
    %c0_11 = arith.constant 0 : index
    %c0_12 = arith.constant 0 : index
    %48 = vector.load %arg7[%c0_11, %c0_12] : memref<8x256xf32, #tpu.memory_space<vmem>>, vector<8x256xf32>
    tpu.vector_store %arg7[%c0_11, %c0_12], %45 {strides = array<i32>} : memref<8x256xf32, #tpu.memory_space<vmem>>, vector<8x256xf32>,
    %cst_13 = arith.constant dense<0.000000e+00> : vector<8xf32>
    %49 = vector.multi_reduction <add>, %47, %cst_13 [1] : vector<8x256xf32> to vector<8xf32>
    %50 = vector.shape_cast %49 : vector<8xf32> to vector<8x1xf32>
    %cst_14 = arith.constant 3.906250e-03 : f32
    %51 = vector.broadcast %cst_14 : f32 to vector<8x1xf32>
    %52 = arith.mulf %50, %51 : vector<8x1xf32>
    %c0_15 = arith.constant 0 : index
    %c0_16 = arith.constant 0 : index
    %53 = vector.load %arg3[%c0_15, %c0_16] : memref<8x1xf32, #tpu.memory_space<vmem>>, vector<8x1xf32>
    %c0_17 = arith.constant 0 : index
    %c0_18 = arith.constant 0 : index
    %54 = memref.load %arg6[%c0_17, %c0_18] : memref<1x1xf32, #tpu.memory_space<smem>>
    %55 = vector.broadcast %54 : f32 to vector<8x1xf32>
    %56 = arith.mulf %53, %55 : vector<8x1xf32>
    %57 = tpu.iota {dimensions = array<i32: 1>} : vector<8x2xi32>
    %c0_i32_19 = arith.constant 0 : i32
    %58 = vector.broadcast %c0_i32_19 : i32 to vector<8x2xi32>
    %59 = arith.cmpi eq, %57, %58 : vector<8x2xi32>
    %60 = vector.shape_cast %56 : vector<8x1xf32> to vector<8x1xf32>
    %61 = vector.broadcast %60 : vector<8x1xf32> to vector<8x2xf32>
    %62 = vector.shape_cast %52 : vector<8x1xf32> to vector<8x1xf32>
    %63 = vector.broadcast %62 : vector<8x1xf32> to vector<8x2xf32>
    %64 = arith.select %59, %61, %63 : vector<8x2xi1>, vector<8x2xf32>
    %c0_20 = arith.constant 0 : index
    %c0_21 = arith.constant 0 : index
    %65 = vector.load %arg8[%c0_20, %c0_21] : memref<8x2xf32, #tpu.memory_space<vmem>>, vector<8x2xf32>
    tpu.vector_store %arg8[%c0_20, %c0_21], %64 {strides = array<i32>} : memref<8x2xf32, #tpu.memory_space<vmem>>, vector<8x2xf32>,
    return
  }
  func.func @transform_0(%arg0: i32) -> (i32, i32) {
    %c0_i32 = arith.constant 0 : i32
    %c0_i32_0 = arith.constant 0 : i32
    return %arg0, %c0_i32 : i32, i32
  }
  func.func @transform_1(%arg0: i32) -> (i32, i32) {
    %c0_i32 = arith.constant 0 : i32
    %c0_i32_0 = arith.constant 0 : i32
    return %arg0, %c0_i32 : i32, i32
  }
  func.func @transform_2(%arg0: i32) -> (i32, i32) {
    %c0_i32 = arith.constant 0 : i32
    %c0_i32_0 = arith.constant 0 : i32
    return %arg0, %c0_i32 : i32, i32
  }
  func.func @transform_3(%arg0: i32) -> (i32, i32) {
    %c0_i32 = arith.constant 0 : i32
    %c0_i32_0 = arith.constant 0 : i32
    %c0_i32_1 = arith.constant 0 : i32
    return %c0_i32, %c0_i32_0 : i32, i32
  }
  func.func @transform_4(%arg0: i32) -> (i32, i32) {
    %c0_i32 = arith.constant 0 : i32
    %c0_i32_0 = arith.constant 0 : i32
    %c0_i32_1 = arith.constant 0 : i32
    return %c0_i32, %c0_i32_0 : i32, i32
  }
  func.func @transform_5(%arg0: i32) -> (i32, i32) {
    %c0_i32 = arith.constant 0 : i32
    %c0_i32_0 = arith.constant 0 : i32
    %c0_i32_1 = arith.constant 0 : i32
    return %c0_i32, %c0_i32_0 : i32, i32
  }
  func.func @transform_6(%arg0: i32) -> (i32, i32) {
    %c0_i32 = arith.constant 0 : i32
    %c0_i32_0 = arith.constant 0 : i32
    return %arg0, %c0_i32 : i32, i32
  }
  func.func @transform_7(%arg0: i32) -> (i32, i32) {
    %c0_i32 = arith.constant 0 : i32
    %c0_i32_0 = arith.constant 0 : i32
    return %arg0, %c0_i32 : i32, i32
  }
}

</mosaic_0001>

<bundles_post_ra>
// kernel: tpu_custom_call.1
= control target key start
LH: loop header
LB: loop body
LE: loop exit
PB: predicated region body
PF: predicated region fallthrough
CT: control target
= control target key end

     0   :  { %s1072_s0 = inlined_call_operand.hbm [shape: f32[16,256], index: 0, kind: input, shape index: {}]   ;;  %s1073_s1 = inlined_call_operand.vmem [shape: bf16[16,256], index: 1, kind: input, shape index: {}]   ;;  %s1074_s2 = inlined_call_operand.vmem [shape: f32[16,1], index: 2, kind: input, shape index: {}]   ;;  %s1075_s3 = inlined_call_operand.vmem [shape: f32[4,256], index: 3, kind: input, shape index: {}]   ;;  %s1076_s4 = inlined_call_operand.vmem [shape: f32[4,256], index: 4, kind: input, shape index: {}]   ;;  %s1077_s5 = inlined_call_operand.<no memory space> [shape: f32[1,1], index: 5, kind: input, shape index: {}]   ;;  %s1078_s6 = inlined_call_operand.hbm [shape: f32[16,256], index: 6, kind: output, shape index: {0}]   ;;  %s1079_s7 = inlined_call_operand.vmem [shape: f32[16,2], index: 7, kind: output, shape index: {1}]  }
   0x1   :  { %13 = sst [smem:[#allocation2]] %s1077_s5 }
   0x2   :  { %14 = vsyncpa [#allocation4], 0 }
   0x3   :  { %16 = vsyncpa [#allocation4 + $0x1], 0 }
   0x4   :  { %17 = vsyncpa [#allocation5], 0 }
   0x5   :  { %19 = vsyncpa [#allocation5 + $0x1], 0  ;;  %s871_s26 = smov 0   ;;  %s873_s27 = smov 0  }
   0x6   :  { %s875_s28 = smov 0   ;;  %s877_s29 = smov 0  }
   0x7 LB: > { %s892_s5 = sadd.s32 4294967295, %s823_s29   ;;  %s652_s30 = sadd.s32 4294967294, %s823_s29   ;;  %s823_s29 = sphi %s877_s29, %s1094_s29   ;;  %s819_s28 = sphi %s875_s28, %s1093_s28   ;;  %s815_s27 = sphi %s873_s27, %s1092_s27   ;;  %s811_s26 = sphi %s871_s26, %s1091_s26  }
   0x8   : > { %s896_s8 = sadd.s32 1, %s823_s29   ;;  %s32_s9 = sadd.s32 1, %s819_s28 }
   0x9   : > { %s29_s10 = ssub.s32 %s823_s29, %s896_s8  ;;  %p39_p0 = scmp.ne.s32.totalorder %s819_s28, %s815_s27 }
   0xa   : > { %p30_p1 = scmp.eq.s32.totalorder %s29_s10, 0  ;;  %p40_p2 = scmp.eq.s32.totalorder %s823_s29, 0 }
   0xb   : > { %p45_p3 = scmp.ne.s32.totalorder %s815_s27, %s811_s26  ;;  %p46_p4 = scmp.eq.s32.totalorder %s892_s5, 0 }
   0xc   : > { %s908_s11 = scalar_select %p30_p1, %s819_s28, %s32_s9  }
   0xd   : > { %p910_p5 = por %p40_p2, %p39_p0  ;;  %p914_p6 = por %p46_p4, %p45_p3 }
   0xe   : > { %p184_p7 = scmp.eq.s32.totalorder %s892_s5, 1  ;;  %p190_p8 = scmp.eq.s32.totalorder %s652_s30, 1 }
   0xf   : > { %p691_p10 = scmp.lt.s32.totalorder %s823_s29, 2  ;;  %s245_s16 = sand.u32 1, %s819_s28  }
  0x10   : > { %p921_p11 = por %p184_p7, %p39_p0  ;;  %p925_p12 = por %p190_p8, %p45_p3 }
  0x11   : > { %s676_s17 = sshll.u32 %s823_s29, 8  ;;  %s655_s18 = sshll.u32 %s245_s16, 4 }
  0x12   : > { %s1083_s14 = scalar_select %p921_p11, 1, 0 }
  0x13   : > { %s1084_s15 = scalar_select %p925_p12, 1, 0 }
  0x14   : > { %s934_s21 = scalar_lea.hbm %s1072_s0, %s676_s17  ;;  %s249_s22 = scalar_lea.vmem [#allocation3], %s655_s18 }
  0x15   : > { %s257_s23 = sshll.u32 %s249_s22, 4  ;;  %p938_p13 = pnand %p691_p10, %p910_p5  ;;  %s942_s23 = int_to_ptr.vmem [resolvable:$true] %s257_s23 }
  0x16   : > { %s246_s25 = scalar_lea.sflag [#allocation4], %s245_s16  ;;  %s727_s30 = scalar_lea.hbm %s934_s21, 256 }
  0x17   : > { %p728_p2 = scmp.ne.s32.totalorder %s934_s21, %s727_s30  ;;  %p729_p3 = pneg %p938_p13 }
  0x18   : > { %s732_s12 = scalar_lea.hbm %s1072_s0, 512  ;;  %p733_p5 = scmp.lt.u32.totalorder %s934_s21, %s1072_s0 }
  0x19   : > { %p730_p4 = pnand %p729_p3, %p728_p2  ;;  %p734_p8 = scmp.lt.u32.totalorder %s732_s12, %s727_s30 }
  0x1a   : > { %p736_p9 = scmp.lt.u32.totalorder %s727_s30, %s934_s21 }
  0x1b   : > { %p731_p7 = pneg %p730_p4  ;;  %p735_p10 = por %p734_p8, %p733_p5 }
  0x1d   : > { %p737_p0 = por %p736_p9, %p735_p10 }
  0x1f   : > { %p738_p1 = pnand %p737_p0, %p731_p7 }
  0x21   : > { %741 = shalt.err (!%p738_p1)
}
  0x22   : > { %s742_s16 = scalar_lea.vmem %s942_s23, 256  ;;  %s825_s19 = smov [#allocation3]  }
  0x23   : > { %p743_p2 = scmp.ne.s32.totalorder %s942_s23, %s742_s16  ;;  %s747_s20 = sshll.u32 %s825_s19, 4  ;;  %s748_s20 = int_to_ptr.vmem [resolvable:$false] %s747_s20 }
  0x24   : > { %s749_s22 = scalar_lea.vmem %s748_s20, 512  ;;  %p750_p11 = scmp.lt.s32.totalorder %s942_s23, %s748_s20 }
  0x25   : > { %p745_p4 = pnand %p743_p2, %p729_p3  ;;  %p751_p5 = scmp.lt.s32.totalorder %s749_s22, %s742_s16 }
  0x27   : > { %p746_p12 = pneg %p745_p4  ;;  %p752_p8 = por %p751_p5, %p750_p11 }
  0x29   : > { %p753_p9 = pnand %p752_p8, %p746_p12 }
  0x2b   : > { %756 = shalt.err (!%p753_p9)
}
  0x2c   : > { %686 = dma.hbm_to_vmem [thread:$0]  (!%p938_p13), %s934_s21, 256, %s942_s23, %s246_s25  }
  0x2d   : > { %p1086_p0 = scmp.lt.s32.totalorder %s823_s29, 3  ;;  %p1087_p1 = scmp.ge.s32.totalorder %s823_s29, 1 }
  0x2f   : > { %p278_p3 = pnand %p1087_p1, %p1086_p0 }
  0x30   : > { %s976_s30 = sand.u32 (!%p278_p3), 1, %s815_s27  }
  0x31   : > { %281 = sbr.rel (%p278_p3) target bundleno = 247 (0xf7), region = 44  ;;  %s659_s9 = sshll.u32 (!%p278_p3), %s976_s30, 4 }
  0x32   : > { %s284_s10 = scalar_lea.sflag (!%p278_p3), [#allocation4], %s976_s30  ;;  %s287_s24 = scalar_lea.vmem (!%p278_p3), [#allocation3], %s659_s9 }
  0x38   : > { %802 = dma.done.wait (%p914_p6), %s284_s10, 256  }
  0x39   : > { %804 = vsyncadd (%p914_p6), %s284_s10, 4294967040  ;;  %p331_p11 = scmp.lt.s32.totalorder %s892_s5, 1  ;;  %v352_v0 = vlaneseq  ;;  %v826_v1 = vmov 0   ;;  %v344_v5 = vld [vmem:[%s287_s24] sm:$0xff]  ;;  %v345_v6 = vld [vmem:[%s287_s24 + $0x8] sm:$0xff]  ;;  %s498_s20 = sld [smem:[#allocation2]] }
  0x3a   : > { %726 = vset.pattern.permute.xlu0 %v826_v1  ;;  %v349_v8 = vld [vmem:[%s1075_s3] ss:$4 sm:$0x3]  ;;  %v665_v14 = vld [vmem:[%s1075_s3 + $0x1] ss:$4 sm:$0x3] }
  0x3b   : > { %s332_s21 = scalar_select %p331_p11, %s892_s5, 1  ;;  %v353_v2 = vshrl.u32 %v352_v0, 7  ;;  %v350_v9 = vld [vmem:[%s1076_s4] ss:$4 sm:$0x3] }
  0x3c   : > { %v666_v19 = vld [vmem:[%s1076_s4 + $0x1] ss:$4 sm:$0x3]  ;;  %v667_v28 = vld [vmem:[%s1075_s3 + $0x2] ss:$4 sm:$0x3] }
  0x3d   : > { %s989_s23 = sshll.u32 %s332_s21, 3  ;;  %v354_v3 = vsub.s32 0, %v353_v2  ;;  %v358_v4 = vsub.s32 1, %v353_v2  ;;  %v668_v31 = vld [vmem:[%s1076_s4 + $0x2] ss:$4 sm:$0x3] }
  0x3e   : > { %s335_s17 = scalar_lea.vmem %s1073_s1, %s989_s23  ;;  %v669_v40 = vld [vmem:[%s1075_s3 + $0x3] ss:$4 sm:$0x3]  ;;  %s339_s24 = scalar_lea.vmem %s1074_s2, %s989_s23 }
  0x3f   : > { %v346_v7 = vld [vmem:[%s335_s17] sm:$0xff]  ;;  %v355_v10 = vrot.slane %v349_v8, %v354_v3  ;;  %v359_v11 = vrot.slane %v349_v8, %v358_v4  ;;  %v368_v12 = vrot.slane %v350_v9, %v354_v3  ;;  %v372_v13 = vrot.slane %v350_v9, %v358_v4  ;;  %s324_s21 = scalar_lea.vmem [#allocation6], %s659_s9  ;;  %s678_s25 = sshll.u32 %s892_s5, 8 }
  0x40   : > { %v347_v15 = vunpack.c.l.bf16 %v346_v7  ;;  %v348_v16 = vunpack.c.h.bf16 %v346_v7  ;;  %v391_v22 = vrot.slane %v665_v14, %v354_v3  ;;  %v395_v23 = vrot.slane %v665_v14, %v358_v4  ;;  %v670_v47 = vld [vmem:[%s1076_s4 + $0x3] ss:$4 sm:$0x3]  ;;  %s531_s12 = sshll.u32 %s324_s21, 4  ;;  %s1029_s18 = scalar_lea.hbm %s1078_s6, %s678_s25  ;;  %s532_s12 = int_to_ptr.vmem [resolvable:$true] %s531_s12 }
  0x41   : > { %v362_v17 = vmul.f32 %v355_v10, %v344_v5  ;;  %v363_v18 = vmul.f32 %v359_v11, %v345_v6  ;;  %v404_v26 = vrot.slane %v666_v19, %v354_v3  ;;  %v408_v27 = vrot.slane %v666_v19, %v358_v4  ;;  %v497_v10 = vld [vmem:[%s339_s24] sm:$0xff]  ;;  %s513_s16 = scalar_lea.sflag [#allocation5], %s976_s30  ;;  %s757_s19 = scalar_lea.vmem %s532_s12, 256 }
  0x42   : > { %v427_v34 = vrot.slane %v667_v28, %v354_v3  ;;  %v431_v35 = vrot.slane %v667_v28, %v358_v4  ;;  %v440_v38 = vrot.slane %v668_v31, %v354_v3  ;;  %v444_v39 = vrot.slane %v668_v31, %v358_v4  ;;  %p758_p6 = scmp.ne.s32.totalorder %s532_s12, %s757_s19  ;;  %p1088_p12 = scmp.ne.s32.totalorder %s1083_s14, 0 }
  0x43   : > { %v375_v20 = vadd.f32 %v368_v12, %v362_v17  ;;  %v376_v21 = vadd.f32 %v372_v13, %v363_v18  ;;  %v463_v50 = vrot.slane %v669_v40, %v354_v3  ;;  %v467_v51 = vrot.slane %v669_v40, %v358_v4 }
  0x44   : > { %v476_v54 = vrot.slane %v670_v47, %v354_v3  ;;  %v480_v55 = vrot.slane %v670_v47, %v358_v4  ;;  %v499_v11 = vstv %s498_s20  ;;  %p759_p13 = pnand %p758_p6, %p1088_p12  ;;  %s827_s20 = smov [#allocation6]  }
  0x45   : > { %v377_v24 = vmul.f32 %v375_v20, %v347_v15  ;;  %v378_v25 = vmul.f32 %v376_v21, %v348_v16  ;;  %v500_v12 = vmul.f32 %v499_v11, %v497_v10  ;;  %s761_s22 = sshll.u32 %s827_s20, 4  ;;  %s762_s22 = int_to_ptr.vmem [resolvable:$false] %s761_s22 }
  0x46   : > { %p760_p7 = pneg %p759_p13  ;;  %s763_s9 = scalar_lea.vmem %s762_s22, 512 }
  0x47   : > { %v398_v29 = vmul.f32 %v391_v22, %v377_v24  ;;  %v399_v30 = vmul.f32 %v395_v23, %v378_v25  ;;  %v379_v43 = vmul.f32 %v377_v24, %v377_v24  ;;  %v380_v44 = vmul.f32 %v378_v25, %v378_v25  ;;  %p764_p10 = scmp.lt.s32.totalorder %s532_s12, %s762_s22  ;;  %p765_p2 = scmp.lt.s32.totalorder %s763_s9, %s757_s19 }
  0x49   : > { %v411_v32 = vadd.f32 %v404_v26, %v398_v29  ;;  %v412_v33 = vadd.f32 %v408_v27, %v399_v30  ;;  %p766_p4 = por %p765_p2, %p764_p10 }
  0x4b   : > { %v413_v36 = vmul.f32 %v411_v32, %v347_v15  ;;  %v414_v37 = vmul.f32 %v412_v33, %v348_v16  ;;  %p767_p5 = pnand %p766_p4, %p760_p7 }
  0x4d   : > { %v434_v41 = vmul.f32 %v427_v34, %v413_v36  ;;  %v435_v42 = vmul.f32 %v431_v35, %v414_v37  ;;  %v415_v45 = vmul.f32 %v413_v36, %v413_v36  ;;  %v416_v46 = vmul.f32 %v414_v37, %v414_v37 }
  0x4f   : > { %v447_v48 = vadd.f32 %v440_v38, %v434_v41  ;;  %v448_v49 = vadd.f32 %v444_v39, %v435_v42  ;;  %v417_v56 = vadd.f32 %v415_v45, %v379_v43  ;;  %v418_v57 = vadd.f32 %v416_v46, %v380_v44 }
  0x51   : > { %v449_v52 = vmul.f32 %v447_v48, %v347_v15  ;;  %v450_v53 = vmul.f32 %v448_v49, %v348_v16 }
  0x53   : > { %v451_v58 = vmul.f32 %v449_v52, %v449_v52  ;;  %v452_v59 = vmul.f32 %v450_v53, %v450_v53  ;;  %v470_v60 = vmul.f32 %v463_v50, %v449_v52  ;;  %v471_v61 = vmul.f32 %v467_v51, %v450_v53 }
  0x55   : > { %v483_v62 = vadd.f32 %v476_v54, %v470_v60  ;;  %v484_v63 = vadd.f32 %v480_v55, %v471_v61  ;;  %v453_v1 = vadd.f32 %v451_v58, %v417_v56  ;;  %v454_v2 = vadd.f32 %v452_v59, %v418_v57 }
  0x57   : > { %v485_v5 = vmul.f32 %v483_v62, %v347_v15  ;;  %v486_v6 = vmul.f32 %v484_v63, %v348_v16 }
  0x59   : > { %v487_v7 = vmul.f32 %v485_v5, %v485_v5  ;;  %v488_v8 = vmul.f32 %v486_v6, %v486_v6  ;;  %491 = vst [vmem:[%s324_s21] sm:$0xff] %v485_v5  ;;  %492 = vst [vmem:[%s324_s21 + $0x8] sm:$0xff] %v486_v6 }
  0x5b   : > { %v489_v9 = vadd.f32 %v487_v7, %v453_v1  ;;  %v490_v3 = vadd.f32 %v488_v8, %v454_v2 }
  0x5d   : > { %v493_v4 = vadd.f32 %v490_v3, %v489_v9 }
  0x5f   : > { %494 = vadd.xlane.f32.xlu0 %v493_v4 }
  0x75   : > { %506 = vperm.xlu0 %726, %v500_v12  }
  0x76   : > { %770 = shalt.err (!%p767_p5)
}
  0x77   : > { %s771_s5 = scalar_lea.hbm %s1029_s18, 256  ;;  %s775_s24 = scalar_lea.hbm %s1078_s6, 512 }
  0x78   : > { %p772_p8 = scmp.ne.s32.totalorder %s1029_s18, %s771_s5  ;;  %p776_p1 = scmp.lt.u32.totalorder %s1029_s18, %s1078_s6 }
  0x79   : > { %p777_p3 = scmp.lt.u32.totalorder %s775_s24, %s771_s5  ;;  %p779_p6 = scmp.lt.u32.totalorder %s771_s5, %s1029_s18 }
  0x7a   : > { %p773_p9 = pnand %p772_p8, %p1088_p12 }
  0x7b   : > { %p778_p11 = por %p777_p3, %p776_p1 }
  0x7c   : > { %p774_p0 = pneg %p773_p9 }
  0x7d   : > { %p780_p13 = por %p779_p6, %p778_p11 }
  0x7f   : > { %p781_p7 = pnand %p780_p13, %p774_p0 }
  0x81   : > { %784 = shalt.err (!%p781_p7)
}
  0x82   : > { %681 = dma.vmem_to_hbm [thread:$0]  (%p1088_p12), %s532_s12, 256, %s1029_s18, %s513_s16   ;;  %v502_v13 = vand.u32 127, %v352_v0  ;;  %vm510_vm1 = vcmask 15360  }
  0x83   : > { %s343_s19 = scalar_lea.vmem %s1079_s7, %s989_s23 }
  0x84   : > { %vm503_vm0 = vcmp.eq.s32.totalorder %v502_v13, 0 }
  0xec   : > { %v495_v14 = vpop.xlane.xlu0 %494 }
  0xed   : > { %v496_v15 = vmul.f32 0.00390625, %v495_v14 }
  0xf4   : > { %v507_v16 = vpop.permute.xlu0 %506 }
  0xf5   : > { %v509_v17 = vsel %vm503_vm0, %v507_v16, %v496_v15 }
  0xf6   : > { %511 = vst.msk [vmem:[%s343_s19] sm:$0xff] %vm510_vm1, %v509_v17 }
  0xf7 PF: > { %s546_s14 = sand.u32 1, %s811_s26   ;;  %p1089_p10 = scmp.ne.s32.totalorder %s1084_s15, 0 }
  0xf8   : > { %p1090_p12 = scmp.ge.s32.totalorder %s823_s29, 2  ;;  %s547_s12 = scalar_lea.sflag [#allocation5], %s546_s14 }
  0xfa   : > { %p688_p2 = pnand %p1090_p12, %p1089_p10 }
  0xfc   : > { %806 = dma.done.wait (!%p688_p2), %s547_s12, 256  }
  0xfd   : > { %808 = vsyncadd (!%p688_p2), %s547_s12, 4294967040  ;;  %p22_p4 = scmp.ge.s32.totalorder %s896_s8, 4   ;;  %s1091_s26 = smov %s815_s27 }
  0xfe   : > { %s1092_s27 = smov %s819_s28  ;;  %s1093_s28 = smov %s908_s11 }
  0xff   : > { %s1094_s29 = smov %s896_s8  ;;  %24 = sbr.rel (!%p22_p4) target bundleno = 7 (0x7), region = 113 }
 0x106   :  { %559 = vsyncpa [#allocation4], 1 }
 0x107   :  { %561 = vsyncpa [#allocation4 + $0x1], 1 }
 0x108   :  { %562 = vsyncpa [#allocation5], 1 }
 0x109   :  { %564 = vsyncpa [#allocation5 + $0x1], 1 }

</bundles_post_ra>
